<compile_context>
chip_gen: v6e
topology: v6e:2x2x1
jax: 0.10.0
libtpu: 0.0.40
codegen_flags: <defaults>
</compile_context>

<pallas_src>
import jax
import jax.numpy as jnp
from jax.experimental import pallas as pl
from jax.experimental.pallas import tpu as pltpu

INIT = 0.01


def _round_up(x, m):
    return ((x + m - 1) // m) * m


def envelope_linear_kernel(x_ref, w_ref, b_ref, o_ref):
    # x_ref: (TM, H)    activation rows (no bias column)
    # w_ref: (H, Npad)  transposed, lane-padded main weight (resident)
    # b_ref: (1, Npad)  bias row = w[:, :, H] flattened + padded (resident)
    # o_ref: (TM, Npad) lane-dense output tile
    acc = jnp.dot(x_ref[...], w_ref[...], preferred_element_type=jnp.float32)
    o_ref[...] = (acc + b_ref[...]).astype(o_ref.dtype)


def envelope_linear(data, w, *, tm=512):
    """data: (n, j, n_hidden); w: (n_det, j, n_hidden+1) -> (n, j, n_det, j)."""
    n, j, h = data.shape
    k, i, f = w.shape
    assert f == h + 1, "weight feature dim must be n_hidden + 1"

    M = n * j
    N = k * i
    N_pad = _round_up(N, 128)

    # Row-tile size: multiple of 8 (f32 sublane) unless M itself is tiny.
    if M % 8 == 0:
        TM = min(_round_up(min(tm, M), 8), M)
    else:
        TM = M
    grid_m = pl.cdiv(M, TM)

    x = data.reshape(M, h)

    # Weight plumbing (tiny arrays, done once outside the kernel):
    #   - split off the bias column (fused as an add; bias feature is 1.0)
    #   - transpose main weight to (H, N): canonical MXU orientation
    #   - zero-pad N to a multiple of 128 for lane-dense output stores
    w_main_t = jnp.transpose(w[:, :, :h].reshape(N, h), (1, 0))   # (h, N)
    w_bias = w[:, :, h].reshape(1, N)                             # (1, N)
    if N_pad != N:
        w_main_t = jnp.pad(w_main_t, ((0, 0), (0, N_pad - N)))
        w_bias = jnp.pad(w_bias, ((0, 0), (0, N_pad - N)))

    bytes_per = jnp.dtype(data.dtype).itemsize
    cost = pl.CostEstimate(
        flops=2 * M * N_pad * h,
        transcendentals=0,
        bytes_accessed=bytes_per * (M * h + h * N_pad + N_pad + M * N_pad),
    )

    out_pad = pl.pallas_call(
        envelope_linear_kernel,
        out_shape=jax.ShapeDtypeStruct((M, N_pad), data.dtype),
        grid=(grid_m,),
        in_specs=[
            pl.BlockSpec((TM, h), lambda m: (m, 0)),       # X tile, pipelined over M
            pl.BlockSpec((h, N_pad), lambda m: (0, 0)),    # weight, resident
            pl.BlockSpec((1, N_pad), lambda m: (0, 0)),    # bias row, resident
        ],
        out_specs=pl.BlockSpec((TM, N_pad), lambda m: (m, 0)),
        compiler_params=pltpu.CompilerParams(
            dimension_semantics=("parallel",),             # shards across TCs on v7x
        ),
        cost_estimate=cost,
    )(x, w_main_t, w_bias)

    # Drop lane padding, then restore the (n, j, k, i) view.
    return out_pad[:, :N].reshape(n, j, k, i)


if __name__ == "__main__":
    key = jax.random.PRNGKey(0)
    n_samples, n_spin_det, n_determinants, n_hidden = 8, 4, 16, 32

    k_data, k_w = jax.random.split(key)
    data = jax.random.normal(k_data, (n_samples, n_spin_det, n_hidden), dtype=jnp.float32)
    # Deterministic parameter init mirroring tc.normal(0.0, INIT, shape).
    w = INIT * jax.random.normal(
        k_w, (n_determinants, n_spin_det, n_hidden + 1), dtype=jnp.float32
    )

    out = jax.block_until_ready(envelope_linear(data, w))

    # Reference (pure JAX) check of the einsum semantics.
    bias = jnp.ones((n_samples, n_spin_det, 1), dtype=data.dtype)
    data_w_bias = jnp.concatenate([data, bias], axis=-1)
    ref = jnp.einsum("njf,kif->njki", data_w_bias, w)

    assert out.shape == (n_samples, n_spin_det, n_determinants, n_spin_det)
    assert jnp.allclose(out, ref, atol=1e-5, rtol=1e-5)
    print("KERNEL_OK")
</pallas_src>

<mosaic_0001>
module attributes {stable_mosaic.version = 11 : i64} {
  func.func @envelope_linear_kernel(%arg0: i32, %arg1: memref<32x32xf32, #tpu.memory_space<vmem>>, %arg2: memref<32x128xf32, #tpu.memory_space<vmem>>, %arg3: memref<1x128xf32, #tpu.memory_space<vmem>>, %arg4: memref<32x128xf32, #tpu.memory_space<vmem>>) attributes {dimension_semantics = [#tpu.dimension_semantics<parallel>], iteration_bounds = array<i64: 1>, scalar_prefetch = 0 : i64, scratch_operands = 0 : i64, tpu.core_type = #tpu.core_type<tc>, window_params = [{transform_indices = @transform_0, window_bounds = array<i64: 32, 32>}, {pipeline_mode = #tpu.pipeline_mode<synchronous>, transform_indices = @transform_1, window_bounds = array<i64: 32, 128>}, {pipeline_mode = #tpu.pipeline_mode<synchronous>, transform_indices = @transform_2, window_bounds = array<i64: 1, 128>}, {transform_indices = @transform_3, window_bounds = array<i64: 32, 128>}]} {
    %c0 = arith.constant 0 : index
    %c0_0 = arith.constant 0 : index
    %0 = vector.load %arg1[%c0, %c0_0] : memref<32x32xf32, #tpu.memory_space<vmem>>, vector<32x32xf32>
    %c0_1 = arith.constant 0 : index
    %c0_2 = arith.constant 0 : index
    %1 = vector.load %arg2[%c0_1, %c0_2] : memref<32x128xf32, #tpu.memory_space<vmem>>, vector<32x128xf32>
    %cst = arith.constant dense<0.000000e+00> : vector<32x128xf32>
    %2 = tpu.matmul %0, %1, %cst {dimension_numbers = #tpu.dot_dimension_numbers<[1], [0], [0], [1], [0, 0, 1, 1], [], []>} : vector<32x32xf32>, vector<32x128xf32>, vector<32x128xf32> -> vector<32x128xf32>
    %c0_3 = arith.constant 0 : index
    %c0_4 = arith.constant 0 : index
    %3 = vector.load %arg3[%c0_3, %c0_4] : memref<1x128xf32, #tpu.memory_space<vmem>>, vector<1x128xf32>
    %4 = vector.broadcast %3 : vector<1x128xf32> to vector<32x128xf32>
    %5 = arith.addf %2, %4 : vector<32x128xf32>
    %c0_5 = arith.constant 0 : index
    %c0_6 = arith.constant 0 : index
    %6 = vector.load %arg4[%c0_5, %c0_6] : memref<32x128xf32, #tpu.memory_space<vmem>>, vector<32x128xf32>
    tpu.vector_store %arg4[%c0_5, %c0_6], %5 {strides = array<i32>} : memref<32x128xf32, #tpu.memory_space<vmem>>, vector<32x128xf32>,
    return
  }
  func.func @transform_0(%arg0: i32) -> (i32, i32) {
    %c0_i32 = arith.constant 0 : i32
    %c0_i32_0 = arith.constant 0 : i32
    return %arg0, %c0_i32 : i32, i32
  }
  func.func @transform_1(%arg0: i32) -> (i32, i32) {
    %c0_i32 = arith.constant 0 : i32
    %c0_i32_0 = arith.constant 0 : i32
    %c0_i32_1 = arith.constant 0 : i32
    return %c0_i32, %c0_i32_0 : i32, i32
  }
  func.func @transform_2(%arg0: i32) -> (i32, i32) {
    %c0_i32 = arith.constant 0 : i32
    %c0_i32_0 = arith.constant 0 : i32
    %c0_i32_1 = arith.constant 0 : i32
    return %c0_i32, %c0_i32_0 : i32, i32
  }
  func.func @transform_3(%arg0: i32) -> (i32, i32) {
    %c0_i32 = arith.constant 0 : i32
    %c0_i32_0 = arith.constant 0 : i32
    return %arg0, %c0_i32 : i32, i32
  }
}

</mosaic_0001>

<bundles_post_ra>
// kernel: tpu_custom_call.1
= control target key start
LH: loop header
LB: loop body
LE: loop exit
PB: predicated region body
PF: predicated region fallthrough
CT: control target
= control target key end

     0   :  { %8 = vsyncpa [#allocation3], 0  ;;  %s330_s0 = inlined_call_operand.hbm [shape: f32[32,32], index: 0, kind: input, shape index: {}]   ;;  %s331_s1 = inlined_call_operand.hbm [shape: f32[32,128], index: 1, kind: input, shape index: {}]   ;;  %s332_s2 = inlined_call_operand.vmem [shape: f32[1,128], index: 2, kind: input, shape index: {}]   ;;  %s333_s3 = inlined_call_operand.hbm [shape: f32[32,128], index: 3, kind: output, shape index: {}]  }
   0x1   :  { %9 = vsyncpa [#allocation6], 0 }
   0x2   :  { %10 = vsyncpa [#allocation4], 0  ;;  %s284_s12 = smov [#allocation2]  }
   0x3   :  { %s16_s13 = sshll.u32 %s284_s12, 4  ;;  %s17_s13 = int_to_ptr.vmem [resolvable:$true] %s16_s13 }
   0x4   :  { %s226_s14 = scalar_lea.vmem %s17_s13, 512  ;;  %p231_p1 = scmp.lt.s32.totalorder %s17_s13, %s17_s13 }
   0x5   :  { %p227_p0 = scmp.ne.s32.totalorder %s17_s13, %s226_s14  ;;  %p232_p2 = scmp.lt.s32.totalorder %s226_s14, %s226_s14 }
   0x7   :  { %p233_p3 = por %p232_p2, %p231_p1 }
   0x9   :  { %p234_p4 = pnand %p233_p3, %p227_p0 }
   0xb   :  { %237 = shalt.err (!%p234_p4)
}
   0xc   :  { %s285_s15 = smov 128   ;;  %s286_s16 = smov 8  }
   0xd   :  { %22 = dma.hbm_to_vmem [thread:$0]  %s330_s0, 512, %s17_s13, [#allocation3], %s285_s15, %s285_s15, %s286_s16  }
   0xe   :  { %s287_s19 = smov [#allocation5]  }
   0xf   :  { %s28_s20 = sshll.u32 %s287_s19, 4  ;;  %s29_s20 = int_to_ptr.vmem [resolvable:$true] %s28_s20 }
  0x10   :  { %s246_s21 = scalar_lea.vmem %s29_s20, 512  ;;  %p251_p6 = scmp.lt.s32.totalorder %s29_s20, %s29_s20 }
  0x11   :  { %p247_p5 = scmp.ne.s32.totalorder %s29_s20, %s246_s21  ;;  %p252_p7 = scmp.lt.s32.totalorder %s246_s21, %s246_s21 }
  0x13   :  { %p253_p8 = por %p252_p7, %p251_p6 }
  0x15   :  { %p254_p9 = pnand %p253_p8, %p247_p5 }
  0x17   :  { %257 = shalt.err (!%p254_p9)
}
  0x18   :  { %34 = dma.hbm_to_vmem [thread:$0]  %s331_s1, 512, %s29_s20, [#allocation6], %s285_s15, %s285_s15, %s286_s16  }
  0x19   :  { %278 = dma.done.wait [#allocation3], 512  }
  0x1a   :  { %279 = vsyncadd [#allocation3], 4294966784 }
  0x1b   :  { %280 = dma.done.wait [#allocation6], 512  }
  0x1c   :  { %281 = vsyncadd [#allocation6], 4294966784  ;;  %v50_v0 = vld [vmem:[#allocation5 + $0x18] sm:$0xff]  ;;  %v49_v1 = vld [vmem:[#allocation5 + $0x10] sm:$0xff]  ;;  %vm58_vm0 = vcmask 261120   ;;  %s288_s24 = smov [#allocation7]  }
  0x1d   :  { %191 = vmatprep.subr.mxu0 %v50_v0  ;;  %205 = vmatprep.subr.mxu1 %v50_v0  ;;  %v48_v2 = vld [vmem:[#allocation5 + $0x8] sm:$0xff]  ;;  %v47_v3 = vld [vmem:[#allocation5] sm:$0xff]  ;;  %v45_v5 = vld [vmem:[#allocation2 + $0x10] sm:$0xff]  ;;  %s165_s25 = sshll.u32 %s288_s24, 4  ;;  %s166_s25 = int_to_ptr.vmem [resolvable:$true] %s165_s25 }
  0x1e   :  { %192 = vmatpush3.msra.mxu0 %v50_v0  ;;  %209 = vmatpush3.msra.mxu1 %v50_v0  ;;  %v43_v4 = vld [vmem:[#allocation2] sm:$0xff]  ;;  %v44_v6 = vld [vmem:[#allocation2 + $0x8] sm:$0xff]  ;;  %v46_v7 = vld [vmem:[#allocation2 + $0x18] sm:$0xff]  ;;  %s258_s26 = scalar_lea.vmem %s166_s25, 512  ;;  %p263_p11 = scmp.lt.s32.totalorder %s166_s25, %s166_s25 }
  0x1f   :  { %193 = vmatprep.subr.mxu0 %v49_v1  ;;  %206 = vmatprep.subr.mxu1 %v49_v1  ;;  %v178_v8 = vld [vmem:[%s332_s2] ss:$0 sm:$0xff]  ;;  %p259_p10 = scmp.ne.s32.totalorder %s166_s25, %s258_s26  ;;  %p264_p12 = scmp.lt.s32.totalorder %s258_s26, %s258_s26 }
  0x20   :  { %194 = vmatpush3.msra.mxu0 %v49_v1  ;;  %210 = vmatpush3.msra.mxu1 %v49_v1 }
  0x21   :  { %195 = vmatprep.subr.mxu0 %v48_v2  ;;  %207 = vmatprep.subr.mxu1 %v48_v2  ;;  %p265_p13 = por %p264_p12, %p263_p11 }
  0x22   :  { %196 = vmatpush3.msra.mxu0 %v48_v2  ;;  %211 = vmatpush3.msra.mxu1 %v48_v2 }
  0x23   :  { %197 = vmatprep.subr.mxu0 %v47_v3  ;;  %208 = vmatprep.subr.mxu1 %v47_v3  ;;  %p266_p0 = pnand %p265_p13, %p259_p10 }
  0x24   :  { %198 = vmatpush3.msra.mxu0 %v47_v3  ;;  %212 = vmatpush3.msra.mxu1 %v47_v3 }
  0x25   :  { %199 = vmatprep.mubr.msk.f32.mxu0 %vm58_vm0, %v43_v4  ;;  %202 = vmatprep.mubr.msk.f32.mxu1 %vm58_vm0, %v45_v5 }
  0x26   :  { %200 = vmatmul.mubr.msk.f32.vlgmr.msra.gmra.mxu0 %vm58_vm0, %v44_v6  ;;  %203 = vmatmul.mubr.msk.f32.vlgmr.msra.gmra.mxu1 %vm58_vm0, %v46_v7 }
  0xe6   :  { %v201_v9 = vpop.f32.mrf.mxu0  ;;  %v204_v10 = vpop.f32.mrf.mxu1 }
  0xe7   :  { %v143_v11 = vadd.f32 %v201_v9, %v178_v8  ;;  %v153_v12 = vadd.f32 %v204_v10, %v178_v8 }
  0xe8   :  { %v137_v13 = vpop.f32.mrf.mxu0  ;;  %v147_v14 = vpop.f32.mrf.mxu1 }
  0xe9   :  { %157 = vst [vmem:[#allocation7 + $0x8] sm:$0xff] %v143_v11  ;;  %159 = vst [vmem:[#allocation7 + $0x18] sm:$0xff] %v153_v12  ;;  %v138_v15 = vadd.f32 %v178_v8, %v137_v13  ;;  %v148_v16 = vadd.f32 %v178_v8, %v147_v14 }
  0xeb   :  { %156 = vst [vmem:[#allocation7] sm:$0xff] %v138_v15  ;;  %158 = vst [vmem:[#allocation7 + $0x10] sm:$0xff] %v148_v16 }
  0xec   :  { %269 = shalt.err (!%p266_p0)
}
  0xed   :  { %171 = dma.vmem_to_hbm [thread:$0]  %s166_s25, 512, %s333_s3, [#allocation4], %s285_s15, %s285_s15, %s286_s16  }
  0xee   :  { %282 = dma.done.wait [#allocation4], 512  }
  0xef   :  { %283 = vsyncadd [#allocation4], 4294966784 }
  0xf0   :  { %175 = vsyncpa [#allocation3], 1 }
  0xf1   :  { %176 = vsyncpa [#allocation6], 1 }
  0xf2   :  { %177 = vsyncpa [#allocation4], 1 }

</bundles_post_ra>
